<compile_context>
chip_gen: v7x
topology: tpu7x:2x2x1
jax: 0.10.0
libtpu: 0.0.40
codegen_flags: <defaults>
</compile_context>

<pallas_src>
import jax
import jax.numpy as jnp
from jax.experimental import pallas as pl
from jax.experimental.pallas import tpu as pltpu


def _round_up(x, m):
    return (x + m - 1) // m * m


# --------------------------------------------------------------------------
# Pallas kernel: fused [global-sum-pool -> backbone head -> fc -> sigmoid]
# (the 1/(H*W) mean scale is pre-folded into the backbone-head weight)
# --------------------------------------------------------------------------
def classifier_kernel(x_ref, wf_ref, bf_ref, wc_ref, bc_ref, out_ref):
    # x_ref:  (TB, C, H*W)        f32   batch tile of the input
    # wf_ref: (C, FEAT_PAD)       bf16  backbone head weight (mean-scaled, padded)
    # bf_ref: (1, FEAT_PAD)       f32   backbone head bias (padded)
    # wc_ref: (FEAT_PAD, NC_PAD)  bf16  fc weight ((in, out) layout, padded)
    # bc_ref: (1, NC_PAD)         f32   fc bias (padded)
    # out_ref:(TB, NC_PAD)        f32

    x = x_ref[...]                                        # (TB, C, HW)
    pooled = jnp.sum(x, axis=-1)                          # (TB, C)  XLU reduce

    # backbone head: (TB, C) @ (C, FEAT_PAD) + b   (bf16 MXU, f32 accumulate)
    feats = jnp.dot(pooled.astype(jnp.bfloat16), wf_ref[...],
                    preferred_element_type=jnp.float32) + bf_ref[...]

    # Classifier.fc: (TB, FEAT_PAD) @ (FEAT_PAD, NC_PAD) + b
    logits = jnp.dot(feats.astype(jnp.bfloat16), wc_ref[...],
                     preferred_element_type=jnp.float32) + bc_ref[...]

    # Classifier.sigmoid (f32 epilogue; v5e has no bf16 VPU/EUP path)
    out_ref[...] = jax.nn.sigmoid(logits)


def classifier_forward(x_nchw, w_feat, b_feat, w_fc, b_fc):
    """x_nchw: (B, C, H, W) float32  ->  (B, num_classes) float32."""
    B, C, H, W = x_nchw.shape
    HW = H * W
    feat_dim = w_feat.shape[1]          # 1000
    num_classes = w_fc.shape[1]         # 2

    # ---- lane-dense padded sizes ------------------------------------------
    FEAT_PAD = _round_up(feat_dim, 128)     # 1000 -> 1024
    NC_PAD = _round_up(num_classes, 128)    # 2    -> 128

    # ---- weight prep: fold mean scale, zero-pad, pre-cast to bf16 ----------
    wf = jnp.pad((w_feat.astype(jnp.float32) / float(HW)),
                 ((0, 0), (0, FEAT_PAD - feat_dim))).astype(jnp.bfloat16)
    bf = jnp.pad(b_feat.astype(jnp.float32),
                 (0, FEAT_PAD - feat_dim)).reshape(1, FEAT_PAD)
    wc = jnp.pad(w_fc.astype(jnp.float32),
                 ((0, FEAT_PAD - feat_dim), (0, NC_PAD - num_classes))
                 ).astype(jnp.bfloat16)
    bc = jnp.pad(b_fc.astype(jnp.float32),
                 (0, NC_PAD - num_classes)).reshape(1, NC_PAD)

    # ---- batch tile sized for a ~20 MiB working set (fits 32 MiB scoped
    #      VMEM on v7x incl. double-buffering and intermediates) ------------
    x_row_bytes = C * HW * 4
    out_row_bytes = NC_PAD * 4
    weight_bytes = 2 * (C * FEAT_PAD * 2 + FEAT_PAD * 4
                        + FEAT_PAD * NC_PAD * 2 + NC_PAD * 4)
    budget = 20 * 1024 * 1024
    avail = max(budget - weight_bytes, 16 * (x_row_bytes + out_row_bytes))
    tb_cap = max(8, (avail // (2 * (x_row_bytes + out_row_bytes))) // 8 * 8)
    TB = int(min(256, tb_cap, _round_up(B, 8)))

    B_pad = _round_up(B, TB)
    x3 = x_nchw.reshape(B, C, HW).astype(jnp.float32)
    if B_pad != B:
        x3 = jnp.pad(x3, ((0, B_pad - B), (0, 0), (0, 0)))

    grid = (B_pad // TB,)

    out = pl.pallas_call(
        classifier_kernel,
        out_shape=jax.ShapeDtypeStruct((B_pad, NC_PAD), jnp.float32),
        grid=grid,
        in_specs=[
            # x: tiled over batch -> double-buffered, DMA overlaps compute
            pl.BlockSpec((TB, C, HW), lambda b: (b, 0, 0)),
            # weights/biases: constant index_map -> VMEM-resident across steps
            pl.BlockSpec((C, FEAT_PAD), lambda b: (0, 0)),
            pl.BlockSpec((1, FEAT_PAD), lambda b: (0, 0)),
            pl.BlockSpec((FEAT_PAD, NC_PAD), lambda b: (0, 0)),
            pl.BlockSpec((1, NC_PAD), lambda b: (0, 0)),
        ],
        out_specs=pl.BlockSpec((TB, NC_PAD), lambda b: (b, 0)),
        compiler_params=pltpu.CompilerParams(
            dimension_semantics=("parallel",),
            vmem_limit_bytes=32 * 1024 * 1024),
    )(x3, wf, bf, wc, bc)

    return out[:B, :num_classes]


# --------------------------------------------------------------------------
# Deterministic parameter init (PyTorch nn.Linear style: U(-1/sqrt(fan_in), +))
# --------------------------------------------------------------------------
def init_params(key, in_channels, feat_dim=1000, num_classes=2):
    k1, k2, k3, k4 = jax.random.split(key, 4)
    bound_f = 1.0 / jnp.sqrt(in_channels)
    bound_c = 1.0 / jnp.sqrt(feat_dim)
    w_feat = jax.random.uniform(k1, (in_channels, feat_dim),
                                jnp.float32, -bound_f, bound_f)
    b_feat = jax.random.uniform(k2, (feat_dim,), jnp.float32, -bound_f, bound_f)
    w_fc = jax.random.uniform(k3, (feat_dim, num_classes),
                              jnp.float32, -bound_c, bound_c)
    b_fc = jax.random.uniform(k4, (num_classes,), jnp.float32, -bound_c, bound_c)
    return w_feat, b_feat, w_fc, b_fc


# --------------------------------------------------------------------------
# Pure-JAX f32 reference for a sanity check
# --------------------------------------------------------------------------
def reference_forward(x_nchw, w_feat, b_feat, w_fc, b_fc):
    pooled = jnp.mean(x_nchw.reshape(x_nchw.shape[0], x_nchw.shape[1], -1), -1)
    feats = pooled @ w_feat + b_feat
    logits = feats @ w_fc + b_fc
    return jax.nn.sigmoid(logits)


if __name__ == "__main__":
    key = jax.random.PRNGKey(0)
    k_x, k_p = jax.random.split(key)

    B, C, H, W = 2, 4, 16, 16
    NUM_CLASSES = 2

    x = jax.random.normal(k_x, (B, C, H, W), jnp.float32)
    w_feat, b_feat, w_fc, b_fc = init_params(k_p, C, 1000, NUM_CLASSES)

    out = classifier_forward(x, w_feat, b_feat, w_fc, b_fc)
    out = jax.block_until_ready(out)

    ref = reference_forward(x, w_feat, b_feat, w_fc, b_fc)
    assert out.shape == (B, NUM_CLASSES), out.shape
    # bf16 MXU inputs (f32 accumulation) -> loose tolerance vs. f32 reference
    assert jnp.allclose(out, ref, atol=1e-2, rtol=1e-2), (out, ref)

    print("KERNEL_OK")
</pallas_src>

<mosaic_0001>
module attributes {stable_mosaic.version = 11 : i64} {
  func.func @classifier_kernel(%arg0: i32, %arg1: memref<8x4x256xf32, #tpu.memory_space<vmem>>, %arg2: memref<4x1024xbf16, #tpu.memory_space<vmem>>, %arg3: memref<1x1024xf32, #tpu.memory_space<vmem>>, %arg4: memref<1024x128xbf16, #tpu.memory_space<vmem>>, %arg5: memref<1x128xf32, #tpu.memory_space<vmem>>, %arg6: memref<8x128xf32, #tpu.memory_space<vmem>>) attributes {dimension_semantics = [#tpu.dimension_semantics<parallel>], iteration_bounds = array<i64: 1>, scalar_prefetch = 0 : i64, scratch_operands = 0 : i64, tpu.core_type = #tpu.core_type<tc>, window_params = [{transform_indices = @transform_0, window_bounds = array<i64: 8, 4, 256>}, {pipeline_mode = #tpu.pipeline_mode<synchronous>, transform_indices = @transform_1, window_bounds = array<i64: 4, 1024>}, {pipeline_mode = #tpu.pipeline_mode<synchronous>, transform_indices = @transform_2, window_bounds = array<i64: 1, 1024>}, {pipeline_mode = #tpu.pipeline_mode<synchronous>, transform_indices = @transform_3, window_bounds = array<i64: 1024, 128>}, {pipeline_mode = #tpu.pipeline_mode<synchronous>, transform_indices = @transform_4, window_bounds = array<i64: 1, 128>}, {transform_indices = @transform_5, window_bounds = array<i64: 8, 128>}]} {
    %c0 = arith.constant 0 : index
    %c0_0 = arith.constant 0 : index
    %c0_1 = arith.constant 0 : index
    %0 = vector.load %arg1[%c0, %c0_0, %c0_1] : memref<8x4x256xf32, #tpu.memory_space<vmem>>, vector<8x4x256xf32>
    %cst = arith.constant dense<0.000000e+00> : vector<8x4xf32>
    %1 = vector.multi_reduction <add>, %0, %cst [2] : vector<8x4x256xf32> to vector<8x4xf32>
    %2 = arith.truncf %1 : vector<8x4xf32> to vector<8x4xbf16>
    %c0_2 = arith.constant 0 : index
    %c0_3 = arith.constant 0 : index
    %3 = vector.load %arg2[%c0_2, %c0_3] : memref<4x1024xbf16, #tpu.memory_space<vmem>>, vector<4x1024xbf16>
    %cst_4 = arith.constant dense<0.000000e+00> : vector<8x1024xf32>
    %4 = tpu.matmul %2, %3, %cst_4 {dimension_numbers = #tpu.dot_dimension_numbers<[1], [0], [0], [1], [0, 0, 1, 1], [], []>} : vector<8x4xbf16>, vector<4x1024xbf16>, vector<8x1024xf32> -> vector<8x1024xf32>
    %c0_5 = arith.constant 0 : index
    %c0_6 = arith.constant 0 : index
    %5 = vector.load %arg3[%c0_5, %c0_6] : memref<1x1024xf32, #tpu.memory_space<vmem>>, vector<1x1024xf32>
    %6 = vector.broadcast %5 : vector<1x1024xf32> to vector<8x1024xf32>
    %7 = arith.addf %4, %6 : vector<8x1024xf32>
    %8 = arith.truncf %7 : vector<8x1024xf32> to vector<8x1024xbf16>
    %c0_7 = arith.constant 0 : index
    %c0_8 = arith.constant 0 : index
    %9 = vector.load %arg4[%c0_7, %c0_8] : memref<1024x128xbf16, #tpu.memory_space<vmem>>, vector<1024x128xbf16>
    %cst_9 = arith.constant dense<0.000000e+00> : vector<8x128xf32>
    %10 = tpu.matmul %8, %9, %cst_9 {dimension_numbers = #tpu.dot_dimension_numbers<[1], [0], [0], [1], [0, 0, 1, 1], [], []>} : vector<8x1024xbf16>, vector<1024x128xbf16>, vector<8x128xf32> -> vector<8x128xf32>
    %c0_10 = arith.constant 0 : index
    %c0_11 = arith.constant 0 : index
    %11 = vector.load %arg5[%c0_10, %c0_11] : memref<1x128xf32, #tpu.memory_space<vmem>>, vector<1x128xf32>
    %12 = vector.broadcast %11 : vector<1x128xf32> to vector<8x128xf32>
    %13 = arith.addf %10, %12 : vector<8x128xf32>
    %14 = arith.negf %13 : vector<8x128xf32>
    %15 = math.exp %14 : vector<8x128xf32>
    %cst_12 = arith.constant 1.000000e+00 : f32
    %16 = vector.broadcast %cst_12 : f32 to vector<8x128xf32>
    %17 = arith.addf %16, %15 : vector<8x128xf32>
    %18 = arith.divf %16, %17 : vector<8x128xf32>
    %c0_13 = arith.constant 0 : index
    %c0_14 = arith.constant 0 : index
    %19 = vector.load %arg6[%c0_13, %c0_14] : memref<8x128xf32, #tpu.memory_space<vmem>>, vector<8x128xf32>
    tpu.vector_store %arg6[%c0_13, %c0_14], %18 {strides = array<i32>} : memref<8x128xf32, #tpu.memory_space<vmem>>, vector<8x128xf32>,
    return
  }
  func.func @transform_0(%arg0: i32) -> (i32, i32, i32) {
    %c0_i32 = arith.constant 0 : i32
    %c0_i32_0 = arith.constant 0 : i32
    %c0_i32_1 = arith.constant 0 : i32
    return %arg0, %c0_i32, %c0_i32_0 : i32, i32, i32
  }
  func.func @transform_1(%arg0: i32) -> (i32, i32) {
    %c0_i32 = arith.constant 0 : i32
    %c0_i32_0 = arith.constant 0 : i32
    %c0_i32_1 = arith.constant 0 : i32
    return %c0_i32, %c0_i32_0 : i32, i32
  }
  func.func @transform_2(%arg0: i32) -> (i32, i32) {
    %c0_i32 = arith.constant 0 : i32
    %c0_i32_0 = arith.constant 0 : i32
    %c0_i32_1 = arith.constant 0 : i32
    return %c0_i32, %c0_i32_0 : i32, i32
  }
  func.func @transform_3(%arg0: i32) -> (i32, i32) {
    %c0_i32 = arith.constant 0 : i32
    %c0_i32_0 = arith.constant 0 : i32
    %c0_i32_1 = arith.constant 0 : i32
    return %c0_i32, %c0_i32_0 : i32, i32
  }
  func.func @transform_4(%arg0: i32) -> (i32, i32) {
    %c0_i32 = arith.constant 0 : i32
    %c0_i32_0 = arith.constant 0 : i32
    %c0_i32_1 = arith.constant 0 : i32
    return %c0_i32, %c0_i32_0 : i32, i32
  }
  func.func @transform_5(%arg0: i32) -> (i32, i32) {
    %c0_i32 = arith.constant 0 : i32
    %c0_i32_0 = arith.constant 0 : i32
    return %arg0, %c0_i32 : i32, i32
  }
}

</mosaic_0001>

<bundles_post_ra>
// kernel: tpu_custom_call.1
= control target key start
LH: loop header
LB: loop body
LE: loop exit
PB: predicated region body
PF: predicated region fallthrough
CT: control target
= control target key end

     0   :  { %10 = vsyncpa [#allocation3], 0  ;;  %s1750_s0 = inlined_call_operand.hbm [shape: f32[8,4,256], index: 0, kind: input, shape index: {}]   ;;  %s1751_s1 = inlined_call_operand.hbm [shape: bf16[4,1024], index: 1, kind: input, shape index: {}]   ;;  %s1752_s2 = inlined_call_operand.hbm [shape: f32[1,1024], index: 2, kind: input, shape index: {}]   ;;  %s1753_s3 = inlined_call_operand.hbm [shape: bf16[1024,128], index: 3, kind: input, shape index: {}]   ;;  %s1754_s4 = inlined_call_operand.vmem [shape: f32[1,128], index: 4, kind: input, shape index: {}]   ;;  %s1755_s5 = inlined_call_operand.hbm [shape: f32[8,128], index: 5, kind: output, shape index: {}]  }
   0x1   :  { %11 = vsyncpa [#allocation6], 0 }
   0x2   :  { %12 = vsyncpa [#allocation9], 0 }
   0x3   :  { %13 = vsyncpa [#allocation4], 0  ;;  %s1572_s18 = smov [#allocation5]   ;;  %s1573_s20 = smov [#allocation2]  }
   0x4   :  { %s32_s19 = sshll.u32 %s1572_s18, 4  ;;  %s19_s21 = sshll.u32 %s1573_s20, 4  ;;  %s33_s19 = int_to_ptr.vmem [resolvable:$true] %s32_s19  ;;  %s1613_s21 = int_to_ptr.vmem [resolvable:$true] %s19_s21 }
   0x5   :  { %s1454_s24 = scalar_lea.hbm %s1751_s1, 256 }
   0x6   :  { %p1455_p0 = scmp.ne.s32.totalorder %s1751_s1, %s1454_s24  ;;  %p1458_p1 = scmp.lt.u32.totalorder %s1454_s24, %s1751_s1 }
   0x8   :  { %p1460_p2 = pnand %p1458_p1, %p1455_p0 }
   0xa   :  { %1463 = shalt.err (!%p1460_p2)
}
   0xb   :  { %s1464_s29 = scalar_lea.vmem %s33_s19, 256  ;;  %p1469_p4 = scmp.lt.s32.totalorder %s33_s19, %s33_s19 }
   0xc   :  { %p1465_p3 = scmp.ne.s32.totalorder %s33_s19, %s1464_s29  ;;  %p1470_p5 = scmp.lt.s32.totalorder %s1464_s29, %s1464_s29 }
   0xe   :  { %p1471_p6 = por %p1470_p5, %p1469_p4 }
  0x10   :  { %p1472_p7 = pnand %p1471_p6, %p1465_p3 }
  0x12   :  { %1475 = shalt.err (!%p1472_p7)
}
  0x13   :  { %35 = dma.hbm_to_vmem [thread:$0]  %s1751_s1, 256, %s33_s19, [#allocation6]  }
  0x14   :  { %s1476_s9 = scalar_lea.hbm %s1750_s0, 1024 }
  0x15   :  { %p1477_p8 = scmp.ne.s32.totalorder %s1750_s0, %s1476_s9  ;;  %p1480_p9 = scmp.lt.u32.totalorder %s1476_s9, %s1750_s0 }
  0x17   :  { %p1482_p10 = pnand %p1480_p9, %p1477_p8 }
  0x19   :  { %1485 = shalt.err (!%p1482_p10)
}
  0x1a   :  { %s1486_s14 = scalar_lea.vmem %s1613_s21, 1024  ;;  %p1491_p12 = scmp.lt.s32.totalorder %s1613_s21, %s1613_s21 }
  0x1b   :  { %p1487_p11 = scmp.ne.s32.totalorder %s1613_s21, %s1486_s14  ;;  %p1492_p13 = scmp.lt.s32.totalorder %s1486_s14, %s1486_s14 }
  0x1d   :  { %p1493_p0 = por %p1492_p13, %p1491_p12 }
  0x1f   :  { %p1494_p1 = pnand %p1493_p0, %p1487_p11 }
  0x21   :  { %1497 = shalt.err (!%p1494_p1)
}
  0x22   :  { %s1574_s1 = smov 128   ;;  %s1575_s15 = smov 8  }
  0x23   :  { %25 = dma.hbm_to_vmem [thread:$0]  %s1750_s0, 1024, %s1613_s21, [#allocation3], %s1574_s1, %s1574_s1, %s1575_s15  }
  0x24   :  { %s1576_s18 = smov [#allocation7]   ;;  %s1577_s20 = smov [#allocation8]  }
  0x25   :  { %s42_s19 = sshll.u32 %s1576_s18, 4  ;;  %s51_s22 = sshll.u32 %s1577_s20, 4  ;;  %s43_s19 = int_to_ptr.vmem [resolvable:$true] %s42_s19  ;;  %s1644_s22 = int_to_ptr.vmem [resolvable:$true] %s51_s22 }
  0x26   :  { %s1498_s25 = scalar_lea.hbm %s1752_s2, 128 }
  0x27   :  { %p1499_p2 = scmp.ne.s32.totalorder %s1752_s2, %s1498_s25  ;;  %p1502_p3 = scmp.lt.u32.totalorder %s1498_s25, %s1752_s2 }
  0x29   :  { %p1504_p4 = pnand %p1502_p3, %p1499_p2 }
  0x2b   :  { %1507 = shalt.err (!%p1504_p4)
}
  0x2c   :  { %s1508_s0 = scalar_lea.vmem %s43_s19, 128  ;;  %p1513_p6 = scmp.lt.s32.totalorder %s43_s19, %s43_s19 }
  0x2d   :  { %p1509_p5 = scmp.ne.s32.totalorder %s43_s19, %s1508_s0  ;;  %p1514_p7 = scmp.lt.s32.totalorder %s1508_s0, %s1508_s0 }
  0x2f   :  { %p1515_p8 = por %p1514_p7, %p1513_p6 }
  0x31   :  { %p1516_p9 = pnand %p1515_p8, %p1509_p5 }
  0x33   :  { %1519 = shalt.err (!%p1516_p9)
}
  0x34   :  { %45 = dma.hbm_to_vmem [thread:$0]  %s1752_s2, 128, %s43_s19, [#allocation6]  }
  0x35   :  { %s1520_s8 = scalar_lea.hbm %s1753_s3, 8192 }
  0x36   :  { %p1521_p10 = scmp.ne.s32.totalorder %s1753_s3, %s1520_s8  ;;  %p1524_p11 = scmp.lt.u32.totalorder %s1520_s8, %s1753_s3 }
  0x38   :  { %p1526_p12 = pnand %p1524_p11, %p1521_p10 }
  0x3a   :  { %1529 = shalt.err (!%p1526_p12)
}
  0x3b   :  { %s1530_s13 = scalar_lea.vmem %s1644_s22, 8192  ;;  %p1535_p0 = scmp.lt.s32.totalorder %s1644_s22, %s1644_s22 }
  0x3c   :  { %p1531_p13 = scmp.ne.s32.totalorder %s1644_s22, %s1530_s13  ;;  %p1536_p1 = scmp.lt.s32.totalorder %s1530_s13, %s1530_s13 }
  0x3e   :  { %p1537_p2 = por %p1536_p1, %p1535_p0 }
  0x40   :  { %p1538_p3 = pnand %p1537_p2, %p1531_p13 }
  0x42   :  { %1541 = shalt.err (!%p1538_p3)
}
  0x43   :  { %s1578_s2 = smov 64   ;;  %s1579_s14 = smov 4  }
  0x44   :  { %57 = dma.hbm_to_vmem [thread:$0]  %s1753_s3, 8192, %s1644_s22, [#allocation9], %s1578_s2, %s1578_s2, %s1579_s14  }
  0x45   :  { %1564 = dma.done.wait [#allocation3], 1024  }
  0x46   :  { %1565 = vsyncadd [#allocation3], 4294966272 }
  0x47   :  { %1566 = dma.done.wait [#allocation6], 384  }
  0x48   :  { %1567 = vsyncadd [#allocation6], 4294966912 }
  0x49   :  { %1568 = dma.done.wait [#allocation9], 8192  }
  0x4a   :  { %1569 = vsyncadd [#allocation9], 4294959104  ;;  %vm105_vm0 = vcmask 1043456   ;;  %v73_v0 = vld [vmem:[#allocation2] sm:$0xff]  ;;  %v75_v1 = vld [vmem:[#allocation2 + $0x10] sm:$0xff]  ;;  %v158_v40 = vlaneseq  ;;  %vm303_vm1 = vcmask 1041408  }
  0x4b   :  { %v74_v2 = vld [vmem:[#allocation2 + $0x8] sm:$0xff]  ;;  %v89_v3 = vcombine.high %v73_v0, %v73_v0  ;;  %v106_v4 = vsel %vm105_vm0, %v73_v0, 0.0  ;;  %v91_v5 = vcombine.high %v75_v1, %v75_v1  ;;  %v116_v6 = vsel %vm105_vm0, %v75_v1, 0.0  ;;  %v76_v7 = vld [vmem:[#allocation2 + $0x18] sm:$0xff]  ;;  %v77_v8 = vld [vmem:[#allocation2 + $0x20] sm:$0xff] }
  0x4c   :  { %v90_v9 = vcombine.high %v74_v2, %v74_v2  ;;  %v111_v10 = vsel %vm105_vm0, %v74_v2, 0.0  ;;  %v92_v11 = vcombine.high %v76_v7, %v76_v7  ;;  %v121_v12 = vsel %vm105_vm0, %v76_v7, 0.0  ;;  %v78_v13 = vld [vmem:[#allocation2 + $0x28] sm:$0xff]  ;;  %v79_v17 = vld [vmem:[#allocation2 + $0x30] sm:$0xff]  ;;  %v80_v18 = vld [vmem:[#allocation2 + $0x38] sm:$0xff] }
  0x4d   :  { %v107_v14 = vsel %vm105_vm0, %v89_v3, 0.0  ;;  %v117_v15 = vsel %vm105_vm0, %v91_v5, 0.0  ;;  %v93_v16 = vcombine.high %v77_v8, %v77_v8  ;;  %v126_v23 = vsel %vm105_vm0, %v77_v8, 0.0  ;;  %v154_v45 = vld [vmem:[#allocation5] sm:$0xff]  ;;  %v155_v54 = vld [vmem:[#allocation5 + $0x8] sm:$0xff] }
  0x4e   :  { %v108_v19 = vadd.f32 %v107_v14, %v106_v4  ;;  %v118_v20 = vadd.f32 %v117_v15, %v116_v6  ;;  %v112_v21 = vsel %vm105_vm0, %v90_v9, 0.0  ;;  %v122_v22 = vsel %vm105_vm0, %v92_v11, 0.0 }
  0x4f   :  { %v94_v24 = vcombine.high %v78_v13, %v78_v13  ;;  %v113_v25 = vadd.f32 %v112_v21, %v111_v10  ;;  %v123_v26 = vadd.f32 %v122_v22, %v121_v12  ;;  %v127_v27 = vsel %vm105_vm0, %v93_v16, 0.0 }
  0x50   :  { %109 = vadd.xlane.f32.xlu0 %v108_v19  ;;  %119 = vadd.xlane.f32.xlu1 %v118_v20  ;;  %v95_v28 = vcombine.high %v79_v17, %v79_v17  ;;  %v131_v29 = vsel %vm105_vm0, %v78_v13, 0.0  ;;  %v96_v31 = vcombine.high %v80_v18, %v80_v18  ;;  %v136_v32 = vsel %vm105_vm0, %v79_v17, 0.0 }
  0x51   :  { %v132_v30 = vsel %vm105_vm0, %v94_v24, 0.0  ;;  %v141_v33 = vsel %vm105_vm0, %v80_v18, 0.0  ;;  %v128_v36 = vadd.f32 %v127_v27, %v126_v23  ;;  %v1580_v41 = vmov 1983009808  }
  0x52   :  { %v137_v34 = vsel %vm105_vm0, %v95_v28, 0.0  ;;  %v142_v35 = vsel %vm105_vm0, %v96_v31, 0.0  ;;  %v133_v37 = vadd.f32 %v132_v30, %v131_v29  ;;  %v267_v42 = vunpack.c.l.s4 %v1580_v41  ;;  %v1386_v41 = vld [vmem:[#allocation8 + $0x40] sm:$0xff]  }
  0x53   :  { %v138_v38 = vadd.f32 %v137_v34, %v136_v32  ;;  %v143_v39 = vadd.f32 %v142_v35, %v141_v33  ;;  %v1691_v43 = vshrl.u32 %v158_v40, 7  ;;  %v265_v47 = vcombine.high %v154_v45, %v154_v45 }
  0x54   :  { %114 = vadd.xlane.f32.xlu0 %v113_v25  ;;  %124 = vadd.xlane.f32.xlu1 %v123_v26  ;;  %v268_v44 = vunpack.c.0.s8 %v267_v42  ;;  %v282_v55 = vcombine.high %v155_v54, %v155_v54  ;;  %v1581_v56 = vmov 0   ;;  %v215_v63 = vand.u32 127, %v158_v40  ;;  %v1387_v42 = vld [vmem:[#allocation8 + $0xc0] sm:$0xff]  }
  0x55   :  { %360 = vmatprep.mubr.bf16.mxu0 %v1581_v56  ;;  %401 = vmatprep.mubr.bf16.mxu1 %v1581_v56  ;;  %vm248_vm2 = vcmask 1041409   ;;  %vm250_vm3 = vcmask 1042434   ;;  %vm252_vm4 = vcmask 1043459   ;;  %vm254_vm5 = vcmask 1044484  }
  0x56   :  { %v271_v46 = vsub.s32 %v268_v44, %v1691_v43  ;;  %v218_v4 = vsub.s32 %v215_v63, %v1691_v43  ;;  %vm256_vm6 = vcmask 1045509   ;;  %vm258_vm7 = vcmask 1046534   ;;  %v1388_v44 = vld [vmem:[#allocation8] sm:$0xff]   ;;  %v1407_v63 = vld [vmem:[#allocation8 + $0xe8] sm:$0xff]  }
  0x57   :  { %vm260_vm8 = vcmask 1047559   ;;  %vm299_vm9 = vcmask 31744  }
  0x58   :  { %129 = vadd.xlane.f32.xlu0 %v128_v36  ;;  %134 = vadd.xlane.f32.xlu1 %v133_v37  ;;  %v272_v48 = vrot.slane %v154_v45, %v271_v46  ;;  %v279_v49 = vrot.slane %v265_v47, %v271_v46  ;;  %v289_v57 = vrot.slane %v155_v54, %v271_v46  ;;  %v1389_v45 = vld [vmem:[#allocation8 + $0x80] sm:$0xff]   ;;  %v1391_v47 = vld [vmem:[#allocation8 + $0xc8] sm:$0xff]   ;;  %v1398_v54 = vld [vmem:[#allocation8 + $0x58] sm:$0xff]  }
  0x59   :  { %v296_v58 = vrot.slane %v282_v55, %v271_v46  ;;  %v1390_v46 = vld [vmem:[#allocation8 + $0x48] sm:$0xff]   ;;  %v1399_v55 = vld [vmem:[#allocation8 + $0xd8] sm:$0xff]  }
  0x5a   :  { %v280_v50 = vcombine.high %v272_v48, %v272_v48  ;;  %v281_v51 = vcombine.high %v279_v49, %v279_v49  ;;  %v305_v52 = vsel %vm303_vm1, %v272_v48, 0  ;;  %v311_v53 = vsel %vm303_vm1, %v279_v49, 0  ;;  %v1392_v48 = vld [vmem:[#allocation8 + $0x8] sm:$0xff]  }
  0x5b   :  { %v297_v59 = vcombine.high %v289_v57, %v289_v57  ;;  %v298_v60 = vcombine.high %v296_v58, %v296_v58  ;;  %v317_v61 = vsel %vm303_vm1, %v289_v57, 0  ;;  %v323_v62 = vsel %vm303_vm1, %v296_v58, 0  ;;  %v1393_v49 = vld [vmem:[#allocation8 + $0x88] sm:$0xff]   ;;  %v1401_v57 = vld [vmem:[#allocation8 + $0x98] sm:$0xff]   ;;  %v1402_v58 = vld [vmem:[#allocation8 + $0x60] sm:$0xff]  }
  0x5c   :  { %139 = vadd.xlane.f32.xlu0 %v138_v38  ;;  %144 = vadd.xlane.f32.xlu1 %v143_v39 }
  0x5d   :  { %1203 = vmatprep.subr.msk.bf16.mxu0 %vm303_vm1, %v280_v50  ;;  %1205 = vmatprep.subr.msk.bf16.mxu1 %vm303_vm1, %v281_v51  ;;  %v1394_v50 = vld [vmem:[#allocation8 + $0x50] sm:$0xff]  }
  0x5e   :  { %329 = vmatpush1.bf16.msra.mxu0 %v305_v52  ;;  %370 = vmatpush1.bf16.msra.mxu1 %v311_v53  ;;  %v1395_v51 = vld [vmem:[#allocation8 + $0xd0] sm:$0xff]  }
  0x5f   :  { %1207 = vmatprep.subr.msk.bf16.mxu0 %vm303_vm1, %v297_v59  ;;  %1209 = vmatprep.subr.msk.bf16.mxu1 %vm303_vm1, %v298_v60  ;;  %v1396_v52 = vld [vmem:[#allocation8 + $0x10] sm:$0xff]   ;;  %v1403_v59 = vld [vmem:[#allocation8 + $0xe0] sm:$0xff]  }
  0x60   :  { %v1397_v53 = vld [vmem:[#allocation8 + $0x90] sm:$0xff]   ;;  %v1404_v60 = vld [vmem:[#allocation8 + $0x20] sm:$0xff]  }
  0xdd   :  { %v110_v0 = vpop.xlane.xlu0 %109  ;;  %v120_v1 = vpop.xlane.xlu1 %119 }
  0xde   :  { %v146_v2 = vpack.c.bf16 %v110_v0, %v110_v0  ;;  %v148_v3 = vpack.c.bf16 %v120_v1, %v120_v1  ;;  %v1408_v0 = vld [vmem:[#allocation8 + $0x28] sm:$0xff]  }
  0xdf   :  { %v1409_v1 = vld [vmem:[#allocation8 + $0xa8] sm:$0xff]  }
  0xe0   :  { %v206_v5 = vunpack.c.l.b16 %v146_v2  ;;  %v208_v10 = vunpack.c.l.b16 %v148_v3  ;;  %v1410_v2 = vld [vmem:[#allocation8 + $0x70] sm:$0xff]  }
  0xe1   :  { %v115_v6 = vpop.xlane.xlu0 %114  ;;  %v125_v7 = vpop.xlane.xlu1 %124  ;;  %v1411_v3 = vld [vmem:[#allocation8 + $0xf0] sm:$0xff]  }
  0xe2   :  { %v147_v8 = vpack.c.bf16 %v115_v6, %v115_v6  ;;  %v149_v9 = vpack.c.bf16 %v125_v7, %v125_v7  ;;  %v219_v13 = vrot.slane %v206_v5, %v218_v4  ;;  %v227_v20 = vrot.slane %v208_v10, %v218_v4  ;;  %v1413_v5 = vld [vmem:[#allocation8 + $0xb0] sm:$0xff]   ;;  %v1414_v6 = vld [vmem:[#allocation8 + $0x78] sm:$0xff]   ;;  %v1418_v10 = vld [vmem:[#allocation8 + $0x140] sm:$0xff]  }
  0xe3   :  { %v1415_v7 = vld [vmem:[#allocation8 + $0xf8] sm:$0xff]  }
  0xe4   :  { %v207_v11 = vunpack.c.l.b16 %v147_v8  ;;  %v209_v12 = vunpack.c.l.b16 %v149_v9  ;;  %v1416_v8 = vld [vmem:[#allocation8 + $0x38] sm:$0xff]  }
  0xe5   :  { %v130_v14 = vpop.xlane.xlu0 %129  ;;  %v135_v15 = vpop.xlane.xlu1 %134  ;;  %v1417_v9 = vld [vmem:[#allocation8 + $0xb8] sm:$0xff]  }
  0xe6   :  { %v223_v16 = vrot.slane %v207_v11, %v218_v4  ;;  %v231_v17 = vrot.slane %v209_v12, %v218_v4  ;;  %v150_v18 = vpack.c.bf16 %v130_v14, %v130_v14  ;;  %v151_v19 = vpack.c.bf16 %v135_v15, %v135_v15  ;;  %v1419_v11 = vld [vmem:[#allocation8 + $0x1c0] sm:$0xff]   ;;  %v1713_v14 = vld [vmem:[#allocation7] sm:$0xff] }
  0xe7   :  { %v160_v12 = vsub.s32 0, %v1691_v43  ;;  %v164_v15 = vsub.s32 1, %v1691_v43 }
  0xe8   :  { %v249_v21 = vsel %vm248_vm2, %v223_v16, %v219_v13  ;;  %v210_v22 = vunpack.c.l.b16 %v150_v18  ;;  %v211_v23 = vunpack.c.l.b16 %v151_v19  ;;  %v168_v13 = vsub.s32 2, %v1691_v43 }
  0xe9   :  { %v251_v24 = vsel %vm250_vm3, %v227_v20, %v249_v21  ;;  %v140_v25 = vpop.xlane.xlu0 %139  ;;  %v145_v26 = vpop.xlane.xlu1 %144  ;;  %v172_v16 = vsub.s32 3, %v1691_v43  ;;  %v165_v19 = vrot.slane %v1713_v14, %v164_v15  ;;  %v1442_v15 = vld [vmem:[#allocation8 + $0x170] sm:$0xff]  }
  0xea   :  { %v253_v27 = vsel %vm252_vm4, %v231_v17, %v251_v24  ;;  %v235_v28 = vrot.slane %v210_v22, %v218_v4  ;;  %v152_v29 = vpack.c.bf16 %v140_v25, %v140_v25  ;;  %v239_v30 = vrot.slane %v211_v23, %v218_v4 }
  0xeb   :  { %v153_v31 = vpack.c.bf16 %v145_v26, %v145_v26  ;;  %v161_v17 = vrot.slane %v1713_v14, %v160_v12  ;;  %v169_v18 = vrot.slane %v1713_v14, %v168_v13  ;;  %v173_v20 = vrot.slane %v1713_v14, %v172_v16  ;;  %v1443_v16 = vld [vmem:[#allocation8 + $0x1f0] sm:$0xff]  }
  0xec   :  { %v255_v32 = vsel %vm254_vm5, %v235_v28, %v253_v27  ;;  %v212_v33 = vunpack.c.l.b16 %v152_v29  ;;  %v176_v12 = vsub.s32 4, %v1691_v43  ;;  %v184_v13 = vsub.s32 6, %v1691_v43 }
  0xed   :  { %v213_v34 = vunpack.c.l.b16 %v153_v31  ;;  %v257_v36 = vsel %vm256_vm6, %v239_v30, %v255_v32  ;;  %v180_v31 = vsub.s32 5, %v1691_v43  ;;  %v188_v32 = vsub.s32 7, %v1691_v43  ;;  %v1449_v43 = vld [vmem:[#allocation8 + $0x1b8] sm:$0xff]  }
  0xee   :  { %v243_v35 = vrot.slane %v212_v33, %v218_v4 }
  0xef   :  { %v247_v37 = vrot.slane %v213_v34, %v218_v4  ;;  %v1412_v4 = vld [vmem:[#allocation8 + $0x30] sm:$0xff]  }
  0xf0   :  { %v259_v38 = vsel %vm258_vm7, %v243_v35, %v257_v36 }
  0xf1   :  { %v261_v39 = vsel %vm260_vm8, %v247_v37, %v259_v38  ;;  %v1420_v37 = vld [vmem:[#allocation8 + $0x100] sm:$0xff]  }
  0xf2   :  { %v262_v40 = vpack.c.b16 %v261_v39, %v261_v39  ;;  %v1421_v38 = vld [vmem:[#allocation8 + $0x180] sm:$0xff]  }
  0xf4   :  { %1204 = vmatmul.mubr.msk.bf16.vlgmr.msra.gmra.mrb[0].mxu0 %vm299_vm9, %v262_v40  ;;  %1206 = vmatmul.mubr.msk.bf16.vlgmr.msra.gmra.mrb[0].mxu1 %vm299_vm9, %v262_v40 }
  0xf5   :  { %411 = vmatpush1.bf16.msra.mxu0 %v317_v61  ;;  %452 = vmatpush1.bf16.msra.mxu1 %v323_v62  ;;  %v1405_v61 = vld [vmem:[#allocation8 + $0xa0] sm:$0xff]   ;;  %v1406_v62 = vld [vmem:[#allocation8 + $0x68] sm:$0xff]  }
  0xf6   :  { %442 = vmatprep.mubr.bf16.mxu0 %v1581_v56  ;;  %483 = vmatprep.mubr.bf16.mxu1 %v1581_v56  ;;  %v1400_v56 = vld [vmem:[#allocation8 + $0x18] sm:$0xff]  }
  0xf7   :  { %1277 = vmatprep.subr.bf16.mxu0 %v1386_v41  ;;  %1299 = vmatprep.subr.bf16.mxu1 %v1387_v42  ;;  %v1422_v41 = vld [vmem:[#allocation8 + $0x148] sm:$0xff]  }
  0xf8   :  { %v1423_v42 = vld [vmem:[#allocation8 + $0x1c8] sm:$0xff]  }
  0xfc   :  { %1208 = vmatmul.mubr.msk.bf16.vlgmr.msra.gmra.mrb[4].mxu0 %vm299_vm9, %v262_v40  ;;  %1210 = vmatmul.mubr.msk.bf16.vlgmr.msra.gmra.mrb[4].mxu1 %vm299_vm9, %v262_v40 }
  0xfd   :  { %1278 = vmatpush3.bf16.msra.mxu0 %v1388_v44  ;;  %1300 = vmatpush3.bf16.msra.mxu1 %v1389_v45  ;;  %v181_v44 = vrot.slane %v1713_v14, %v180_v31  ;;  %v189_v45 = vrot.slane %v1713_v14, %v188_v32 }
  0xfe   :  { %1279 = vmatprep.subr.bf16.mxu0 %v1390_v46  ;;  %1301 = vmatprep.subr.bf16.mxu1 %v1391_v47 }
 0x101   :  { %1280 = vmatpush3.bf16.msra.mxu0 %v1392_v48  ;;  %1302 = vmatpush3.bf16.msra.mxu1 %v1393_v49  ;;  %v1424_v48 = vld [vmem:[#allocation8 + $0x108] sm:$0xff]  }
 0x102   :  { %1281 = vmatprep.subr.bf16.mxu0 %v1394_v50  ;;  %1303 = vmatprep.subr.bf16.mxu1 %v1395_v51  ;;  %v1425_v49 = vld [vmem:[#allocation8 + $0x188] sm:$0xff]  }
 0x105   :  { %1282 = vmatpush3.bf16.msra.mxu0 %v1396_v52  ;;  %1304 = vmatpush3.bf16.msra.mxu1 %v1397_v53  ;;  %v1426_v52 = vld [vmem:[#allocation8 + $0x150] sm:$0xff]  }
 0x106   :  { %1283 = vmatprep.subr.bf16.mxu0 %v1398_v54  ;;  %1305 = vmatprep.subr.bf16.mxu1 %v1399_v55  ;;  %v1427_v53 = vld [vmem:[#allocation8 + $0x1d0] sm:$0xff]  }
 0x109   :  { %1284 = vmatpush3.bf16.msra.mxu0 %v1400_v56  ;;  %1306 = vmatpush3.bf16.msra.mxu1 %v1401_v57 }
 0x10a   :  { %1285 = vmatprep.subr.bf16.mxu0 %v1402_v58  ;;  %1307 = vmatprep.subr.bf16.mxu1 %v1403_v59 }
 0x10d   :  { %1286 = vmatpush3.bf16.msra.mxu0 %v1404_v60  ;;  %1308 = vmatpush3.bf16.msra.mxu1 %v1405_v61 }
 0x10e   :  { %1287 = vmatprep.subr.bf16.mxu0 %v1406_v62  ;;  %1309 = vmatprep.subr.bf16.mxu1 %v1407_v63  ;;  %v1428_v62 = vld [vmem:[#allocation8 + $0x110] sm:$0xff]  }
 0x10f   :  { %v1429_v63 = vld [vmem:[#allocation8 + $0x190] sm:$0xff]  }
 0x111   :  { %1288 = vmatpush3.bf16.msra.mxu0 %v1408_v0  ;;  %1310 = vmatpush3.bf16.msra.mxu1 %v1409_v1  ;;  %v1430_v0 = vld [vmem:[#allocation8 + $0x158] sm:$0xff]  }
 0x112   :  { %1289 = vmatprep.subr.bf16.mxu0 %v1410_v2  ;;  %1311 = vmatprep.subr.bf16.mxu1 %v1411_v3  ;;  %v1431_v1 = vld [vmem:[#allocation8 + $0x1d8] sm:$0xff]  }
 0x113   :  { %v1432_v2 = vld [vmem:[#allocation8 + $0x118] sm:$0xff]  }
 0x114   :  { %v1433_v3 = vld [vmem:[#allocation8 + $0x198] sm:$0xff]  }
 0x115   :  { %1290 = vmatpush3.bf16.msra.mxu0 %v1412_v4  ;;  %1312 = vmatpush3.bf16.msra.mxu1 %v1413_v5  ;;  %v1434_v4 = vld [vmem:[#allocation8 + $0x160] sm:$0xff]  }
 0x116   :  { %1291 = vmatprep.subr.bf16.mxu0 %v1414_v6  ;;  %1313 = vmatprep.subr.bf16.mxu1 %v1415_v7  ;;  %v1435_v5 = vld [vmem:[#allocation8 + $0x1e0] sm:$0xff]  }
 0x117   :  { %v1436_v6 = vld [vmem:[#allocation8 + $0x120] sm:$0xff]  }
 0x118   :  { %v1437_v7 = vld [vmem:[#allocation8 + $0x1a0] sm:$0xff]  }
 0x119   :  { %1292 = vmatpush3.bf16.msra.mxu0 %v1416_v8  ;;  %1314 = vmatpush3.bf16.msra.mxu1 %v1417_v9  ;;  %v1438_v8 = vld [vmem:[#allocation8 + $0x168] sm:$0xff]  }
 0x11a   :  { %1321 = vmatprep.subr.bf16.mxu0 %v1418_v10  ;;  %1343 = vmatprep.subr.bf16.mxu1 %v1419_v11  ;;  %v1439_v9 = vld [vmem:[#allocation8 + $0x1e8] sm:$0xff]  }
 0x11b   :  { %v1440_v10 = vld [vmem:[#allocation8 + $0x128] sm:$0xff]  }
 0x11c   :  { %v1441_v11 = vld [vmem:[#allocation8 + $0x1a8] sm:$0xff]  }
 0x1c7   :  { %v362_v21 = vpop.f32.mrb[0].mxu0  ;;  %v403_v22 = vpop.f32.mrb[0].mxu1 }
 0x1c8   :  { %v363_v23 = vadd.f32 %v362_v21, %v161_v17  ;;  %v404_v24 = vadd.f32 %v403_v22, %v169_v18  ;;  %v364_v25 = vpop.f32.mrb[1].mxu0  ;;  %v405_v26 = vpop.f32.mrb[1].mxu1  ;;  %v1444_v17 = vld [vmem:[#allocation8 + $0x130] sm:$0xff]   ;;  %v1446_v21 = vld [vmem:[#allocation8 + $0x178] sm:$0xff]  }
 0x1c9   :  { %v365_v27 = vadd.f32 %v364_v25, %v165_v19  ;;  %v406_v28 = vadd.f32 %v405_v26, %v173_v20  ;;  %v366_v29 = vpop.f32.mrb[2].mxu0  ;;  %v407_v30 = vpop.f32.mrb[2].mxu1  ;;  %v1445_v18 = vld [vmem:[#allocation8 + $0x1b0] sm:$0xff]   ;;  %v177_v19 = vrot.slane %v1713_v14, %v176_v12  ;;  %v185_v20 = vrot.slane %v1713_v14, %v184_v13  ;;  %v1447_v22 = vld [vmem:[#allocation8 + $0x1f8] sm:$0xff]  }
 0x1ca   :  { %v367_v33 = vpop.f32.mrb[3].mxu0  ;;  %v408_v34 = vpop.f32.mrb[3].mxu1  ;;  %v492_v39 = vpack.c.bf16 %v363_v23, %v363_v23  ;;  %v494_v40 = vpack.c.bf16 %v404_v24, %v404_v24  ;;  %v1448_v23 = vld [vmem:[#allocation8 + $0x138] sm:$0xff]   ;;  %v1211_v29 = vld [vmem:[%s1754_s4] ss:$0 sm:$0xff]  ;;  %s1582_s4 = smov [#allocation10]  }
 0x1cb   :  { %v493_v35 = vpack.c.bf16 %v365_v27, %v365_v27  ;;  %v495_v36 = vpack.c.bf16 %v406_v28, %v406_v28  ;;  %s1192_s17 = sshll.u32 %s1582_s4, 4  ;;  %s1193_s17 = int_to_ptr.vmem [resolvable:$true] %s1192_s17 }
 0x1cc   :  { %s1542_s18 = scalar_lea.vmem %s1193_s17, 128  ;;  %p1547_p5 = scmp.lt.s32.totalorder %s1193_s17, %s1193_s17 }
 0x1cd   :  { %1051 = vmatprep.mubr.bf16.mxu0 %v493_v35  ;;  %1091 = vmatprep.mubr.bf16.mxu1 %v495_v36  ;;  %p1543_p4 = scmp.ne.s32.totalorder %s1193_s17, %s1542_s18  ;;  %p1548_p6 = scmp.lt.s32.totalorder %s1542_s18, %s1542_s18 }
 0x1ce   :  { %1052 = vmatmul.mubr.bf16.vlgmr.msra.gmra.mrb[8].mxu0 %v492_v39  ;;  %1092 = vmatmul.mubr.bf16.vlgmr.msra.gmra.mrb[8].mxu1 %v494_v40 }
 0x1cf   :  { %1322 = vmatpush3.bf16.msra.mxu0 %v1420_v37  ;;  %1344 = vmatpush3.bf16.msra.mxu1 %v1421_v38  ;;  %v1725_v46 = vpop.f32.mrb[4].mxu0  ;;  %v1727_v47 = vpop.f32.mrb[4].mxu1  ;;  %p1549_p7 = por %p1548_p6, %p1547_p5 }
 0x1d0   :  { %v446_v50 = vpop.f32.mrb[5].mxu0  ;;  %v487_v51 = vpop.f32.mrb[5].mxu1  ;;  %1323 = vmatprep.subr.bf16.mxu0 %v1422_v41  ;;  %1345 = vmatprep.subr.bf16.mxu1 %v1423_v42  ;;  %v445_v24 = vadd.f32 %v1725_v46, %v177_v19  ;;  %v486_v25 = vadd.f32 %v1727_v47, %v185_v20 }
 0x1d1   :  { %v447_v54 = vadd.f32 %v446_v50, %v181_v44  ;;  %v488_v55 = vadd.f32 %v487_v51, %v189_v45  ;;  %v448_v56 = vpop.f32.mrb[6].mxu0  ;;  %v489_v57 = vpop.f32.mrb[6].mxu1  ;;  %p1550_p8 = pnand %p1549_p7, %p1543_p4 }
 0x1d2   :  { %v449_v58 = vpop.f32.mrb[7].mxu0  ;;  %v490_v59 = vpop.f32.mrb[7].mxu1  ;;  %v496_v26 = vpack.c.bf16 %v445_v24, %v445_v24  ;;  %v498_v27 = vpack.c.bf16 %v486_v25, %v486_v25 }
 0x1d3   :  { %v497_v60 = vpack.c.bf16 %v447_v54, %v447_v54  ;;  %v499_v61 = vpack.c.bf16 %v488_v55, %v488_v55  ;;  %1324 = vmatpush3.bf16.msra.mxu0 %v1424_v48  ;;  %1346 = vmatpush3.bf16.msra.mxu1 %v1425_v49 }
 0x1d4   :  { %1325 = vmatprep.subr.bf16.mxu0 %v1426_v52  ;;  %1347 = vmatprep.subr.bf16.mxu1 %v1427_v53 }
 0x1d5   :  { %1131 = vmatprep.mubr.bf16.mxu0 %v497_v60  ;;  %1171 = vmatprep.mubr.bf16.mxu1 %v499_v61 }
 0x1d7   :  { %1326 = vmatpush3.bf16.msra.mxu0 %v1428_v62  ;;  %1348 = vmatpush3.bf16.msra.mxu1 %v1429_v63 }
 0x1d8   :  { %1327 = vmatprep.subr.bf16.mxu0 %v1430_v0  ;;  %1349 = vmatprep.subr.bf16.mxu1 %v1431_v1 }
 0x1db   :  { %1328 = vmatpush3.bf16.msra.mxu0 %v1432_v2  ;;  %1350 = vmatpush3.bf16.msra.mxu1 %v1433_v3 }
 0x1dc   :  { %1329 = vmatprep.subr.bf16.mxu0 %v1434_v4  ;;  %1351 = vmatprep.subr.bf16.mxu1 %v1435_v5 }
 0x1df   :  { %1330 = vmatpush3.bf16.msra.mxu0 %v1436_v6  ;;  %1352 = vmatpush3.bf16.msra.mxu1 %v1437_v7 }
 0x1e0   :  { %1331 = vmatprep.subr.bf16.mxu0 %v1438_v8  ;;  %1353 = vmatprep.subr.bf16.mxu1 %v1439_v9 }
 0x1e3   :  { %1332 = vmatpush3.bf16.msra.mxu0 %v1440_v10  ;;  %1354 = vmatpush3.bf16.msra.mxu1 %v1441_v11 }
 0x1e4   :  { %1333 = vmatprep.subr.bf16.mxu0 %v1442_v15  ;;  %1355 = vmatprep.subr.bf16.mxu1 %v1443_v16 }
 0x1e7   :  { %1334 = vmatpush3.bf16.msra.mxu0 %v1444_v17  ;;  %1356 = vmatpush3.bf16.msra.mxu1 %v1445_v18 }
 0x1e8   :  { %1335 = vmatprep.subr.bf16.mxu0 %v1446_v21  ;;  %1357 = vmatprep.subr.bf16.mxu1 %v1447_v22 }
 0x1eb   :  { %1336 = vmatpush3.bf16.msra.mxu0 %v1448_v23  ;;  %1358 = vmatpush3.bf16.msra.mxu1 %v1449_v43 }
 0x1ee   :  { %1132 = vmatmul.mubr.bf16.vlgmr.msra.gmra.mrb[12].mxu0 %v496_v26  ;;  %1172 = vmatmul.mubr.bf16.vlgmr.msra.gmra.mrb[12].mxu1 %v498_v27 }
 0x2a1   :  { %v1293_v14 = vpop.f32.mrb[8].mxu0  ;;  %v1315_v28 = vpop.f32.mrb[8].mxu1 }
 0x2a2   :  { %v1294_v30 = vpop.f32.mrb[9].mxu0  ;;  %v1316_v31 = vpop.f32.mrb[9].mxu1 }
 0x2a3   :  { %v1295_v32 = vadd.f32 %v1294_v30, %v1293_v14  ;;  %v1317_v33 = vadd.f32 %v1316_v31, %v1315_v28  ;;  %v1296_v34 = vpop.f32.mrb[10].mxu0  ;;  %v1318_v35 = vpop.f32.mrb[10].mxu1 }
 0x2a4   :  { %v1297_v36 = vpop.f32.mrb[11].mxu0  ;;  %v1319_v37 = vpop.f32.mrb[11].mxu1 }
 0x2a5   :  { %v1054_v38 = vadd.f32 %v1295_v32, %v1211_v29 }
 0x2a7   :  { %v1094_v39 = vadd.f32 %v1317_v33, %v1054_v38 }
 0x2c1   :  { %v1337_v40 = vpop.f32.mrb[12].mxu0  ;;  %v1359_v41 = vpop.f32.mrb[12].mxu1 }
 0x2c2   :  { %v1338_v42 = vpop.f32.mrb[13].mxu0  ;;  %v1360_v44 = vpop.f32.mrb[13].mxu1 }
 0x2c3   :  { %v1339_v45 = vadd.f32 %v1338_v42, %v1337_v40  ;;  %v1361_v46 = vadd.f32 %v1360_v44, %v1359_v41  ;;  %v1340_v47 = vpop.f32.mrb[14].mxu0  ;;  %v1362_v48 = vpop.f32.mrb[14].mxu1 }
 0x2c4   :  { %v1341_v49 = vpop.f32.mrb[15].mxu0  ;;  %v1363_v50 = vpop.f32.mrb[15].mxu1 }
 0x2c5   :  { %v1134_v51 = vadd.f32 %v1339_v45, %v1094_v39 }
 0x2c7   :  { %v1174_v52 = vadd.f32 %v1361_v46, %v1134_v51 }
 0x2c9   :  { %v1276_v53 = vmul.f32 -1.442695, %v1174_v52 }
 0x2cb   :  { %1450 = vpow2.f32 %v1276_v53 }
 0x2d5   :  { %v1451_v54 = vpop.eup %1450 }
 0x2d6   :  { %v1182_v55 = vadd.f32 1.0, %v1451_v54 }
 0x2d8   :  { %1452 = vrcp.f32 %v1182_v55 }
 0x2e2   :  { %v1453_v56 = vpop.eup %1452 }
 0x2e3   :  { %1185 = vst [vmem:[#allocation10] sm:$0xff] %v1453_v56 }
 0x2e4   :  { %1553 = shalt.err (!%p1550_p8)
}
 0x2e5   :  { %s1554_s22 = scalar_lea.hbm %s1755_s5, 128 }
 0x2e6   :  { %p1555_p9 = scmp.ne.s32.totalorder %s1755_s5, %s1554_s22  ;;  %p1558_p10 = scmp.lt.u32.totalorder %s1554_s22, %s1755_s5 }
 0x2e8   :  { %p1560_p11 = pnand %p1558_p10, %p1555_p9 }
 0x2ea   :  { %1563 = shalt.err (!%p1560_p11)
}
 0x2eb   :  { %1195 = dma.vmem_to_hbm [thread:$0]  %s1193_s17, 128, %s1755_s5, [#allocation4]  }
 0x2ec   :  { %1570 = dma.done.wait [#allocation4], 128  }
 0x2ed   :  { %1571 = vsyncadd [#allocation4], 4294967168 }
 0x2ee   :  { %1199 = vsyncpa [#allocation3], 1 }
 0x2ef   :  { %1200 = vsyncpa [#allocation6], 1 }
 0x2f0   :  { %1201 = vsyncpa [#allocation9], 1 }
 0x2f1   :  { %1202 = vsyncpa [#allocation4], 1 }

</bundles_post_ra>
